<compile_context>
chip_gen: v5e
topology: v5e:2x2
jax: 0.10.0
libtpu: 0.0.40
codegen_flags: <defaults>
</compile_context>

<pallas_src>
import jax
import jax.numpy as jnp
from jax.experimental import pallas as pl
from jax.experimental.pallas import tpu as pltpu

ALPHA = 0.25
GAMMA = 1.0

_BLOCK_ELEMS = 512 * 1024          # ~2 MiB f32 per input block per grid step
_FOLD_MAX_ELEMS = 1 << 16          # fold batch into rows only for tiny inputs


def _pow_gamma(x, gamma):
    """x**gamma without exp/log on the EUP for the common focal gammas."""
    if gamma == 0.0:
        return jnp.ones_like(x)
    if gamma == 0.5:
        return jnp.sqrt(x)
    if gamma == 1.0:
        return x
    if float(gamma).is_integer() and 2.0 <= gamma <= 8.0:
        out = x
        for _ in range(int(gamma) - 1):
            out = out * x
        return out
    # Non-special gamma: falls back to pow (exp+log on the EUP).
    return jnp.power(x, gamma)


def _largest_tile(dim, quantum, cap):
    """Largest multiple of `quantum` dividing `dim`, <= max(cap, quantum); else dim."""
    best = None
    t = quantum
    limit = min(dim, max(cap, quantum))
    while t <= limit:
        if dim % t == 0:
            best = t
        t += quantum
    return best if best is not None else dim


def _choose_lane(total, sub, cap=2048):
    """Lane width: a multiple-of-128 divisor of `total`, preferring sublane-full ROWS."""
    cands = [l for l in range(128, min(total, cap) + 1, 128) if total % l == 0]
    if not cands:
        return total                      # awkward size: whole thing on the lane axis
    full = [l for l in cands if (total // l) % sub == 0]
    if full:
        return max(full)                  # biggest lane with ROWS a multiple of sub
    tall = [l for l in cands if (total // l) >= sub]
    if tall:
        return max(tall)                  # at least sublane-full vregs
    return min(cands)                     # maximize ROWS for tiny totals


def _plan_rows(rows, sub, lane, parallel_groups):
    """Pick ROW_TILE and the (NS, NR) split of the row-block axis."""
    row_cap = max(sub, _BLOCK_ELEMS // lane)
    # If the batch axis alone can't balance 2 TensorCores (v7x), make sure the
    # row-block axis can be split in two parallel halves.
    if parallel_groups % 2 == 1 and rows >= 2 * sub and (rows // 2) % sub == 0:
        row_cap = min(row_cap, rows // 2)
    row_tile = _largest_tile(rows, sub, row_cap)
    nrt = rows // row_tile
    ns = 2 if (nrt >= 2 and nrt % 2 == 0) else 1
    nr = nrt // ns
    return row_tile, ns, nr


def _make_kernel(alpha, gamma, row_tile, lane):
    alpha = float(alpha)
    gamma = float(gamma)
    if row_tile % 8 == 0:
        acc_rows, groups = 8, row_tile // 8
    else:
        acc_rows, groups = row_tile, 1

    def kernel(pred_fg_ref, pred_bg_ref, tgt_ref, out_ref, acc_ref):
        r = pl.program_id(2)

        @pl.when(r == 0)
        def _init():
            acc_ref[...] = jnp.zeros_like(acc_ref)

        pf = pred_fg_ref[...].astype(jnp.float32)   # (ROW_TILE, LANE)
        pb = pred_bg_ref[...].astype(jnp.float32)
        t = tgt_ref[...].astype(jnp.float32)

        # NOTE: no epsilon clamp on log(), to keep exact parity with the
        # PyTorch module (which also has none).
        a_term = (alpha * _pow_gamma(1.0 - pf, gamma)) * jnp.log(pf)
        b_term = ((1.0 - alpha) * _pow_gamma(1.0 - pb, gamma)) * jnp.log(pb)
        # loss_c = -(t*A + (1-t)*B) = -(B + t*(A-B)); accumulate the positive
        # inner quantity here, negate once in the wrapper.
        val = b_term + t * (a_term - b_term)

        if groups > 1:
            # Sublane tree-sum: keeps the accumulator at (8, LANE) regardless
            # of block height (VPU adds only; no extra acc load/store per vreg).
            val = jnp.sum(val.reshape(groups, acc_rows, lane), axis=0)
        acc_ref[...] += val

        @pl.when(r == pl.num_programs(2) - 1)
        def _finalize():
            # Single cross-lane reduce per (batch, split); lane-dense (8,128) out.
            out_ref[...] = jnp.full((8, 128), jnp.sum(acc_ref[...]),
                                    dtype=jnp.float32)

    return kernel, (acc_rows, lane)


def multi_loss(predictions, targets, *, alpha=ALPHA, gamma=GAMMA):
    """predictions: [B, 2, H, W]; targets: [B, H, W]  ->  scalar mean loss."""
    B, C, H, W = predictions.shape
    assert C == 2, "predictions must have 2 channels (bg, fg)"
    assert targets.shape == (B, H, W)
    HW = H * W
    N = B * HW

    # Sublane quantum follows the narrowest input dtype (8 f32 / 16 bf16).
    itemsize = min(jnp.dtype(predictions.dtype).itemsize,
                   jnp.dtype(targets.dtype).itemsize)
    sub = max(8, 32 // max(1, int(itemsize)))

    lane = _choose_lane(HW, sub)
    rows = HW // lane
    # For tiny problems where a per-batch layout can't fill the sublanes, fold
    # the batch into the row axis (transpose copy is negligible at this size).
    use_fold = (rows < sub) and (N <= _FOLD_MAX_ELEMS)

    if use_fold:
        lane = _choose_lane(N, sub)
        rows = N // lane
        row_tile, ns, nr = _plan_rows(rows, sub, lane, 1)
        kernel, acc_shape = _make_kernel(alpha, gamma, row_tile, lane)
        # [B,2,H,W] -> [2, B*H*W] so both channels are batch-contiguous.
        preds = jnp.transpose(predictions, (1, 0, 2, 3)).reshape(2, rows, lane)
        tgt = targets.reshape(rows, lane)
        grid = (1, ns, nr)
        in_specs = [
            pl.BlockSpec((None, row_tile, lane), lambda g, s, r: (1, s * nr + r, 0)),
            pl.BlockSpec((None, row_tile, lane), lambda g, s, r: (0, s * nr + r, 0)),
            pl.BlockSpec((row_tile, lane), lambda g, s, r: (s * nr + r, 0)),
        ]
        out_specs = pl.BlockSpec((None, None, 8, 128), lambda g, s, r: (g, s, 0, 0))
        out_shape = jax.ShapeDtypeStruct((1, ns, 8, 128), jnp.float32)
        args = (preds, preds, tgt)
    else:
        row_tile, ns, nr = _plan_rows(rows, sub, lane, B)
        kernel, acc_shape = _make_kernel(alpha, gamma, row_tile, lane)
        preds = predictions.reshape(B, 2, rows, lane)   # free, contiguous
        tgt = targets.reshape(B, rows, lane)            # free, contiguous
        grid = (B, ns, nr)
        in_specs = [
            # fg = channel 1, bg = channel 0: SAME HBM array passed twice,
            # channel select fused into the block DMA (no wrapper slice copy).
            pl.BlockSpec((None, None, row_tile, lane),
                         lambda b, s, r: (b, 1, s * nr + r, 0)),
            pl.BlockSpec((None, None, row_tile, lane),
                         lambda b, s, r: (b, 0, s * nr + r, 0)),
            pl.BlockSpec((None, row_tile, lane),
                         lambda b, s, r: (b, s * nr + r, 0)),
        ]
        out_specs = pl.BlockSpec((None, None, 8, 128), lambda b, s, r: (b, s, 0, 0))
        out_shape = jax.ShapeDtypeStruct((B, ns, 8, 128), jnp.float32)
        args = (preds, preds, tgt)

    grid_spec = pltpu.PrefetchScalarGridSpec(
        num_scalar_prefetch=0,
        grid=grid,
        in_specs=in_specs,
        out_specs=out_specs,
        scratch_shapes=[pltpu.VMEM(acc_shape, jnp.float32)],
    )

    partial = pl.pallas_call(
        kernel,
        out_shape=out_shape,
        grid_spec=grid_spec,
        compiler_params=pltpu.CompilerParams(
            dimension_semantics=("parallel", "parallel", "arbitrary"),
            vmem_limit_bytes=32 * 1024 * 1024,
        ),
    )(*args)

    # Finish the tiny reduction on host-side XLA: sum partial sums, negate once
    # (the kernel accumulates the positive inner term), divide by B*H*W.
    return -jnp.sum(partial[:, :, 0, 0]) / jnp.float32(N)


def _reference(predictions, targets, alpha=ALPHA, gamma=GAMMA):
    pred_fg = predictions[:, 1]
    pred_bg = predictions[:, 0]
    fw_fg = alpha * jnp.power(1.0 - pred_fg, gamma)
    fw_bg = (1.0 - alpha) * jnp.power(1.0 - pred_bg, gamma)
    loss_c = -(fw_fg * targets * jnp.log(pred_fg)
               + fw_bg * (1.0 - targets) * jnp.log(pred_bg))
    return loss_c.mean()


if __name__ == "__main__":
    root = jax.random.PRNGKey(0)

    def run_case(B, H, W, key):
        k1, k2 = jax.random.split(key)
        # 2-channel probability maps (softmax over channel) so log() is finite.
        logits = jax.random.normal(k1, (B, 2, H, W), dtype=jnp.float32)
        predictions = jax.nn.softmax(logits, axis=1)
        targets = (jax.random.uniform(k2, (B, H, W), dtype=jnp.float32) > 0.5
                   ).astype(jnp.float32)

        loss = multi_loss(predictions, targets)
        jax.block_until_ready(loss)

        ref = _reference(predictions, targets)
        assert jnp.allclose(loss, ref, rtol=1e-5, atol=1e-6), (B, H, W, loss, ref)

    keys = jax.random.split(root, 3)
    run_case(2, 16, 16, keys[0])      # tiny shape from the spec (fold-B path)
    run_case(2, 128, 128, keys[1])    # aligned shape, batch-parallel grid
    run_case(1, 256, 256, keys[2])    # B=1: exercises the parallel row split (NS=2)

    print("KERNEL_OK")
</pallas_src>

<mosaic_0001>
module attributes {stable_mosaic.version = 11 : i64} {
  func.func @kernel(%arg0: i32, %arg1: i32, %arg2: i32, %arg3: memref<1x4x128xf32, #tpu.memory_space<vmem>>, %arg4: memref<1x4x128xf32, #tpu.memory_space<vmem>>, %arg5: memref<4x128xf32, #tpu.memory_space<vmem>>, %arg6: memref<1x1x8x128xf32, #tpu.memory_space<vmem>>, %arg7: memref<4x128xf32, #tpu.memory_space<vmem>>) attributes {dimension_semantics = [#tpu.dimension_semantics<parallel>, #tpu.dimension_semantics<parallel>, #tpu.dimension_semantics<arbitrary>], iteration_bounds = array<i64: 1, 1, 1>, scalar_prefetch = 0 : i64, scratch_operands = 1 : i64, tpu.core_type = #tpu.core_type<tc>, window_params = [{transform_indices = @transform_0, window_bounds = array<i64: 1, 4, 128>}, {transform_indices = @transform_1, window_bounds = array<i64: 1, 4, 128>}, {transform_indices = @transform_2, window_bounds = array<i64: 4, 128>}, {transform_indices = @transform_3, window_bounds = array<i64: 1, 1, 8, 128>}]} {
    %c0_i32 = arith.constant 0 : i32
    %0 = arith.cmpi eq, %arg2, %c0_i32 : i32
    %1 = arith.extui %0 : i1 to i32
    %c0_i32_0 = arith.constant 0 : i32
    %2 = arith.cmpi ne, %1, %c0_i32_0 : i32
    scf.if %2 {
      %cst_17 = arith.constant 0.000000e+00 : f32
      %29 = vector.broadcast %cst_17 : f32 to vector<4x128xf32>
      %c0_18 = arith.constant 0 : index
      %c0_19 = arith.constant 0 : index
      %30 = vector.load %arg7[%c0_18, %c0_19] : memref<4x128xf32, #tpu.memory_space<vmem>>, vector<4x128xf32>
      tpu.vector_store %arg7[%c0_18, %c0_19], %29 {strides = array<i32>} : memref<4x128xf32, #tpu.memory_space<vmem>>, vector<4x128xf32>,
    } else {
    }
    %c0 = arith.constant 0 : index
    %c0_1 = arith.constant 0 : index
    %c0_2 = arith.constant 0 : index
    %3 = vector.load %arg3[%c0, %c0_1, %c0_2] : memref<1x4x128xf32, #tpu.memory_space<vmem>>, vector<1x4x128xf32>
    %4 = vector.shape_cast %3 : vector<1x4x128xf32> to vector<4x128xf32>
    %c0_3 = arith.constant 0 : index
    %c0_4 = arith.constant 0 : index
    %c0_5 = arith.constant 0 : index
    %5 = vector.load %arg4[%c0_3, %c0_4, %c0_5] : memref<1x4x128xf32, #tpu.memory_space<vmem>>, vector<1x4x128xf32>
    %6 = vector.shape_cast %5 : vector<1x4x128xf32> to vector<4x128xf32>
    %c0_6 = arith.constant 0 : index
    %c0_7 = arith.constant 0 : index
    %7 = vector.load %arg5[%c0_6, %c0_7] : memref<4x128xf32, #tpu.memory_space<vmem>>, vector<4x128xf32>
    %cst = arith.constant 1.000000e+00 : f32
    %8 = vector.broadcast %cst : f32 to vector<4x128xf32>
    %9 = arith.subf %8, %4 : vector<4x128xf32>
    %cst_8 = arith.constant 2.500000e-01 : f32
    %10 = vector.broadcast %cst_8 : f32 to vector<4x128xf32>
    %11 = arith.mulf %10, %9 : vector<4x128xf32>
    %12 = math.log %4 : vector<4x128xf32>
    %13 = arith.mulf %11, %12 : vector<4x128xf32>
    %cst_9 = arith.constant 1.000000e+00 : f32
    %14 = vector.broadcast %cst_9 : f32 to vector<4x128xf32>
    %15 = arith.subf %14, %6 : vector<4x128xf32>
    %cst_10 = arith.constant 7.500000e-01 : f32
    %16 = vector.broadcast %cst_10 : f32 to vector<4x128xf32>
    %17 = arith.mulf %16, %15 : vector<4x128xf32>
    %18 = math.log %6 : vector<4x128xf32>
    %19 = arith.mulf %17, %18 : vector<4x128xf32>
    %20 = arith.subf %13, %19 : vector<4x128xf32>
    %21 = arith.mulf %7, %20 : vector<4x128xf32>
    %22 = arith.addf %19, %21 : vector<4x128xf32>
    %c0_11 = arith.constant 0 : index
    %c0_12 = arith.constant 0 : index
    %23 = vector.load %arg7[%c0_11, %c0_12] : memref<4x128xf32, #tpu.memory_space<vmem>>, vector<4x128xf32>
    %24 = arith.addf %23, %22 : vector<4x128xf32>
    %c0_13 = arith.constant 0 : index
    %c0_14 = arith.constant 0 : index
    %25 = vector.load %arg7[%c0_13, %c0_14] : memref<4x128xf32, #tpu.memory_space<vmem>>, vector<4x128xf32>
    tpu.vector_store %arg7[%c0_13, %c0_14], %24 {strides = array<i32>} : memref<4x128xf32, #tpu.memory_space<vmem>>, vector<4x128xf32>,
    %c0_i32_15 = arith.constant 0 : i32
    %26 = arith.cmpi eq, %arg2, %c0_i32_15 : i32
    %27 = arith.extui %26 : i1 to i32
    %c0_i32_16 = arith.constant 0 : i32
    %28 = arith.cmpi ne, %27, %c0_i32_16 : i32
    scf.if %28 {
      %c0_17 = arith.constant 0 : index
      %c0_18 = arith.constant 0 : index
      %29 = vector.load %arg7[%c0_17, %c0_18] : memref<4x128xf32, #tpu.memory_space<vmem>>, vector<4x128xf32>
      %30 = vector.shape_cast %29 : vector<4x128xf32> to vector<1x4x128xf32>
      %cst_19 = arith.constant dense<0.000000e+00> : vector<1xf32>
      %31 = vector.multi_reduction <add>, %30, %cst_19 [1, 2] : vector<1x4x128xf32> to vector<1xf32>
      %32 = vector.shape_cast %31 : vector<1xf32> to vector<1x1x1xf32>
      %33 = vector.extract %32[0, 0, 0] : f32 from vector<1x1x1xf32>
      %34 = vector.broadcast %33 : f32 to vector<8x128xf32>
      %c0_20 = arith.constant 0 : index
      %c0_21 = arith.constant 0 : index
      %c0_22 = arith.constant 0 : index
      %c0_23 = arith.constant 0 : index
      %35 = vector.load %arg6[%c0_20, %c0_21, %c0_22, %c0_23] : memref<1x1x8x128xf32, #tpu.memory_space<vmem>>, vector<1x1x8x128xf32>
      %36 = vector.shape_cast %35 : vector<1x1x8x128xf32> to vector<8x128xf32>
      %37 = vector.shape_cast %34 : vector<8x128xf32> to vector<1x1x8x128xf32>
      tpu.vector_store %arg6[%c0_20, %c0_21, %c0_22, %c0_23], %37 {strides = array<i32>} : memref<1x1x8x128xf32, #tpu.memory_space<vmem>>, vector<1x1x8x128xf32>,
    } else {
    }
    return
  }
  func.func @transform_0(%arg0: i32, %arg1: i32, %arg2: i32) -> (i32, i32, i32) {
    %c1_i32 = arith.constant 1 : i32
    %0 = arith.muli %arg1, %c1_i32 : i32
    %1 = arith.addi %0, %arg2 : i32
    %c1_i32_0 = arith.constant 1 : i32
    %c0_i32 = arith.constant 0 : i32
    %c0_i32_1 = arith.constant 0 : i32
    return %c1_i32_0, %1, %c0_i32 : i32, i32, i32
  }
  func.func @transform_1(%arg0: i32, %arg1: i32, %arg2: i32) -> (i32, i32, i32) {
    %c1_i32 = arith.constant 1 : i32
    %0 = arith.muli %arg1, %c1_i32 : i32
    %1 = arith.addi %0, %arg2 : i32
    %c0_i32 = arith.constant 0 : i32
    %c0_i32_0 = arith.constant 0 : i32
    %c0_i32_1 = arith.constant 0 : i32
    return %c0_i32, %1, %c0_i32_0 : i32, i32, i32
  }
  func.func @transform_2(%arg0: i32, %arg1: i32, %arg2: i32) -> (i32, i32) {
    %c1_i32 = arith.constant 1 : i32
    %0 = arith.muli %arg1, %c1_i32 : i32
    %1 = arith.addi %0, %arg2 : i32
    %c0_i32 = arith.constant 0 : i32
    %c0_i32_0 = arith.constant 0 : i32
    return %1, %c0_i32 : i32, i32
  }
  func.func @transform_3(%arg0: i32, %arg1: i32, %arg2: i32) -> (i32, i32, i32, i32) {
    %c0_i32 = arith.constant 0 : i32
    %c0_i32_0 = arith.constant 0 : i32
    %c0_i32_1 = arith.constant 0 : i32
    return %arg0, %arg1, %c0_i32, %c0_i32_0 : i32, i32, i32, i32
  }
}

</mosaic_0001>

<bundles_post_ra>
// kernel: tpu_custom_call.1
= control target key start
LH: loop header
LB: loop body
LE: loop exit
PB: predicated region body
PF: predicated region fallthrough
CT: control target
= control target key end

     0   :  { %8 = vsyncpa [#allocation4], 0  ;;  %s279_s0 = inlined_call_operand.hbm [shape: f32[2,4,128], index: 0, kind: input, shape index: {}]   ;;  %s280_s1 = inlined_call_operand.hbm [shape: f32[2,4,128], index: 1, kind: input, shape index: {}]   ;;  %s281_s2 = inlined_call_operand.hbm [shape: f32[4,128], index: 2, kind: input, shape index: {}]   ;;  %s282_s3 = inlined_call_operand.hbm [shape: f32[1,1,8,128], index: 3, kind: output, shape index: {}]  }
   0x1   :  { %9 = vsyncpa [#allocation7], 0  ;;  %s34_s14 = sshll.u32 %s280_s1, 4  ;;  %s35_s14 = int_to_ptr.hbm [resolvable:$true] %s34_s14 }
   0x2   :  { %10 = vsyncpa [#allocation5], 0  ;;  %s242_s15 = smov [#allocation6]   ;;  %s128_s19 = scalar_lea.hbm %s279_s0, 4 }
   0x3   :  { %s36_s16 = sshll.u32 %s242_s15, 4  ;;  %s20_s20 = sshll.u32 %s128_s19, 4  ;;  %s37_s16 = int_to_ptr.vmem [resolvable:$true] %s36_s16  ;;  %s21_s20 = int_to_ptr.hbm [resolvable:$true] %s20_s20 }
   0x4   :  { %39 = dma.hbm_to_vmem [thread:$0]  %s35_s14, 64, %s37_s16, [#allocation7]  }
   0x5   :  { %s243_s21 = smov [#allocation3]   ;;  %s48_s25 = sshll.u32 %s281_s2, 4  ;;  %s49_s25 = int_to_ptr.hbm [resolvable:$true] %s48_s25 }
   0x6   :  { %s22_s22 = sshll.u32 %s243_s21, 4  ;;  %s244_s1 = smov [#allocation8]   ;;  %s23_s22 = int_to_ptr.vmem [resolvable:$true] %s22_s22 }
   0x7   :  { %25 = dma.hbm_to_vmem [thread:$0]  %s21_s20, 64, %s23_s22, [#allocation4]  }
   0x8   :  { %s50_s26 = sshll.u32 %s244_s1, 4  ;;  %s51_s26 = int_to_ptr.vmem [resolvable:$true] %s50_s26 }
   0x9   :  { %53 = dma.hbm_to_vmem [thread:$0]  %s49_s25, 64, %s51_s26, [#allocation7]  }
   0xa   :  { %236 = dma.done.wait [#allocation4], 64  }
   0xb   :  { %237 = vsyncadd [#allocation4], 4294967232 }
   0xc   :  { %238 = dma.done.wait [#allocation7], 128  }
   0xd   :  { %239 = vsyncadd [#allocation7], 4294967168  ;;  %v245_v0 = vmov 0.0   ;;  %v74_v1 = vld [vmem:[#allocation3] sm:$0xf]  ;;  %vm97_vm0 = vcmask 1043456  }
   0xe   :  { %73 = vst [vmem:[#allocation2] sm:$0xf] %v245_v0  ;;  %v75_v2 = vld [vmem:[#allocation6] sm:$0xf]  ;;  %136 = vlog2.f32 %v74_v1  ;;  %v77_v3 = vsub.f32 1.0, %v74_v1  ;;  %s246_s0 = smov [#allocation9]  }
   0xf   :  { %138 = vlog2.f32 %v75_v2  ;;  %v82_v4 = vsub.f32 1.0, %v75_v2  ;;  %v76_v13 = vld [vmem:[#allocation8] sm:$0xf]  ;;  %s115_s2 = sshll.u32 %s246_s0, 4  ;;  %s117_s29 = sshll.u32 %s282_s3, 4  ;;  %s116_s2 = int_to_ptr.vmem [resolvable:$true] %s115_s2  ;;  %s118_s29 = int_to_ptr.hbm [resolvable:$true] %s117_s29 }
  0x10   :  { %v78_v5 = vmul.f32 0.25, %v77_v3 }
  0x11   :  { %v83_v7 = vmul.f32 0.75, %v82_v4 }
  0x14   :  { %v137_v6 = vpop.eup %136 }
  0x15   :  { %v139_v8 = vpop.eup %138  ;;  %v80_v9 = vmul.f32 0.6931472, %v137_v6  ;;  %v90_v16 = vld [vmem:[#allocation2] sm:$0xf] }
  0x16   :  { %v85_v10 = vmul.f32 0.6931472, %v139_v8 }
  0x17   :  { %v81_v11 = vmul.f32 %v80_v9, %v78_v5 }
  0x18   :  { %v86_v12 = vmul.f32 %v85_v10, %v83_v7 }
  0x1a   :  { %v87_v14 = vsub.f32 %v81_v11, %v86_v12 }
  0x1c   :  { %v88_v15 = vmul.f32 %v87_v14, %v76_v13 }
  0x1e   :  { %v89_v17 = vadd.f32 %v88_v15, %v86_v12 }
  0x20   :  { %v91_v18 = vadd.f32 %v90_v16, %v89_v17 }
  0x22   :  { %92 = vst [vmem:[#allocation2] sm:$0xf] %v91_v18 }
  0x29   :  { %v96_v19 = vld [vmem:[#allocation2] sm:$0xf] }
  0x2a   :  { %v98_v20 = vsel %vm97_vm0, %v96_v19, 0.0 }
  0x2b   :  { %99 = vadd.xlane.f32.xlu0 %v98_v20 }
  0x9e   :  { %v100_v21 = vpop.xlane.xlu0 %99 }
  0x9f   :  { %v101_v22 = vrot.slane %v100_v21, 4 }
  0xa1   :  { %v102_v23 = vadd.f32 %v101_v22, %v100_v21 }
  0xa3   :  { %v103_v24 = vrot.slane %v102_v23, 2 }
  0xa5   :  { %v104_v25 = vadd.f32 %v103_v24, %v102_v23 }
  0xa7   :  { %v105_v26 = vrot.slane %v104_v25, 1 }
  0xa9   :  { %v106_v27 = vadd.f32 %v105_v26, %v104_v25 }
  0xab   :  { %129 = vpush %v106_v27 }
  0xdc   :  { %s130_s30 = spop %129 }
  0xdd   :  { %v108_v28 = vstv %s130_s30 }
  0xde   :  { %109 = vst [vmem:[#allocation9] sm:$0xff] %v108_v28 }
  0xdf   :  { %120 = dma.vmem_to_hbm [thread:$0]  %s116_s2, 128, %s118_s29, [#allocation5]  }
  0xe0   :  { %240 = dma.done.wait [#allocation5], 128  }
  0xe1   :  { %241 = vsyncadd [#allocation5], 4294967168 }
  0xe2   :  { %125 = vsyncpa [#allocation4], 1 }
  0xe3   :  { %126 = vsyncpa [#allocation7], 1 }
  0xe4   :  { %127 = vsyncpa [#allocation5], 1 }

</bundles_post_ra>
